<compile_context>
chip_gen: v7x
topology: tpu7x:2x2x1
jax: 0.10.0
libtpu: 0.0.40
codegen_flags: <defaults>
</compile_context>

<pallas_src>
import jax
import jax.numpy as jnp
from jax.experimental import pallas as pl
from jax.experimental.pallas import tpu as pltpu


def _scale_exp_kernel(scale_ref, x_ref, o_ref):
    # scale_ref: SMEM (1,) f32 scalar; x_ref/o_ref: VMEM tiles.
    s = scale_ref[0]
    xf = x_ref[...].astype(jnp.float32)
    o_ref[...] = jnp.exp(xf * s).astype(o_ref.dtype)


def _cdiv(a: int, b: int) -> int:
    return (a + b - 1) // b


def scale_exp(x: jax.Array, scale: jax.Array) -> jax.Array:
    """y = exp(x * scale). `scale` is a float array of shape (1,)."""
    orig_shape = x.shape
    orig_dtype = x.dtype
    total = x.size
    if total == 0:
        return x

    flat = x.reshape(-1)

    # ---- Lane-dense layout: pick the widest 128-multiple lane width that
    # divides the total element count; otherwise fall back to 128 + padding.
    lane = None
    for cand in (1024, 512, 256, 128):
        if total % cand == 0:
            lane = cand
            break
    if lane is None:
        lane = 128

    rows = _cdiv(total, lane)

    # ---- Row tiling: target ~2 MiB (f32) per tile, multiple of 8 sublanes.
    # 2 MiB tiles keep double-buffered in+out well under the 32 MiB default
    # scoped VMEM on v6e/v7x while amortizing per-grid-step overhead.
    target_tile_bytes = 2 * 1024 * 1024
    tile_rows = max(8, target_tile_bytes // (lane * 4))
    tile_rows = (tile_rows // 8) * 8
    if tile_rows >= rows:
        # Single full-extent block along rows (exempt from 8-divisibility).
        tile_rows = rows
        rows_padded = rows
    else:
        rows_padded = _cdiv(rows, tile_rows) * tile_rows

    padded_total = rows_padded * lane
    if padded_total != total:
        flat = jnp.pad(flat, (0, padded_total - total))

    x2d = flat.reshape(rows_padded, lane)
    grid = (rows_padded // tile_rows,)

    out2d = pl.pallas_call(
        _scale_exp_kernel,
        out_shape=jax.ShapeDtypeStruct((rows_padded, lane), orig_dtype),
        grid=grid,
        in_specs=[
            # scalar parameter lives in SMEM, available to every grid step
            pl.BlockSpec(memory_space=pltpu.SMEM),
            # lane-dense tiled input
            pl.BlockSpec((tile_rows, lane), lambda i: (i, 0)),
        ],
        out_specs=pl.BlockSpec((tile_rows, lane), lambda i: (i, 0)),
        compiler_params=pltpu.CompilerParams(
            # Embarrassingly parallel over rows -> let v7x shard across both
            # TensorCores; harmless on single-TC v5e/v6e.
            dimension_semantics=("parallel",),
        ),
    )(scale.astype(jnp.float32).reshape(-1), x2d)

    out = out2d.reshape(-1)
    if padded_total != total:
        out = out[:total]
    return out.reshape(orig_shape)


if __name__ == "__main__":
    key = jax.random.PRNGKey(0)
    # NCHW input consistent with a detection-head feature map.
    x = jax.random.normal(key, (2, 4, 16, 16), dtype=jnp.float32)

    # Deterministic parameter init: matches nn.Parameter(torch.tensor([1.0])).
    init_value = 1.0
    scale = jnp.array([init_value], dtype=jnp.float32)

    y = scale_exp(x, scale)
    y = jax.block_until_ready(y)

    # Sanity check against the pure-JAX reference.
    y_ref = jnp.exp(x * scale[0])
    assert y.shape == x.shape and y.dtype == x.dtype
    assert jnp.allclose(y, y_ref, rtol=1e-6, atol=1e-6)

    # Extra check: ragged shape exercising the pad/fallback path.
    x2 = jax.random.normal(jax.random.PRNGKey(1), (3, 5, 7), dtype=jnp.float32)
    y2 = jax.block_until_ready(scale_exp(x2, scale))
    assert y2.shape == x2.shape and y2.dtype == x2.dtype
    assert jnp.allclose(y2, jnp.exp(x2 * scale[0]), rtol=1e-6, atol=1e-6)

    print("KERNEL_OK")
</pallas_src>

<mosaic_0001>
module attributes {stable_mosaic.version = 11 : i64} {
  func.func @_scale_exp_kernel(%arg0: i32, %arg1: memref<1xf32, #tpu.memory_space<smem>>, %arg2: memref<2x1024xf32, #tpu.memory_space<vmem>>, %arg3: memref<2x1024xf32, #tpu.memory_space<vmem>>) attributes {dimension_semantics = [#tpu.dimension_semantics<parallel>], iteration_bounds = array<i64: 1>, scalar_prefetch = 0 : i64, scratch_operands = 0 : i64, tpu.core_type = #tpu.core_type<tc>, window_params = [{transform_indices = @transform_0, window_bounds = array<i64: 1>}, {transform_indices = @transform_1, window_bounds = array<i64: 2, 1024>}, {transform_indices = @transform_2, window_bounds = array<i64: 2, 1024>}]} {
    %c0 = arith.constant 0 : index
    %0 = memref.load %arg1[%c0] : memref<1xf32, #tpu.memory_space<smem>>
    %c0_0 = arith.constant 0 : index
    %c0_1 = arith.constant 0 : index
    %1 = vector.load %arg2[%c0_0, %c0_1] : memref<2x1024xf32, #tpu.memory_space<vmem>>, vector<2x1024xf32>
    %2 = vector.broadcast %0 : f32 to vector<2x1024xf32>
    %3 = arith.mulf %1, %2 : vector<2x1024xf32>
    %4 = math.exp %3 : vector<2x1024xf32>
    %c0_2 = arith.constant 0 : index
    %c0_3 = arith.constant 0 : index
    %5 = vector.load %arg3[%c0_2, %c0_3] : memref<2x1024xf32, #tpu.memory_space<vmem>>, vector<2x1024xf32>
    tpu.vector_store %arg3[%c0_2, %c0_3], %4 {strides = array<i32>} : memref<2x1024xf32, #tpu.memory_space<vmem>>, vector<2x1024xf32>,
    return
  }
  func.func @transform_0(%arg0: i32) -> i32 {
    %c0_i32 = arith.constant 0 : i32
    %c0_i32_0 = arith.constant 0 : i32
    return %c0_i32 : i32
  }
  func.func @transform_1(%arg0: i32) -> (i32, i32) {
    %c0_i32 = arith.constant 0 : i32
    %c0_i32_0 = arith.constant 0 : i32
    return %arg0, %c0_i32 : i32, i32
  }
  func.func @transform_2(%arg0: i32) -> (i32, i32) {
    %c0_i32 = arith.constant 0 : i32
    %c0_i32_0 = arith.constant 0 : i32
    return %arg0, %c0_i32 : i32, i32
  }
}

</mosaic_0001>

<bundles_post_ra>
// kernel: tpu_custom_call.1
= control target key start
LH: loop header
LB: loop body
LE: loop exit
PB: predicated region body
PF: predicated region fallthrough
CT: control target
= control target key end

     0   :  { %8 = vsyncpa [#allocation4], 0  ;;  %s150_s0 = inlined_call_operand.<no memory space> [shape: f32[1], index: 0, kind: input, shape index: {}]   ;;  %s151_s1 = inlined_call_operand.hbm [shape: f32[2,1024], index: 1, kind: input, shape index: {}]   ;;  %s152_s2 = inlined_call_operand.hbm [shape: f32[2,1024], index: 2, kind: output, shape index: {}]  }
   0x1   :  { %9 = vsyncpa [#allocation5], 0  ;;  %s106_s9 = smov [#allocation3]   ;;  %s58_s13 = scalar_lea.hbm %s151_s1, 256 }
   0x2   :  { %s18_s10 = sshll.u32 %s106_s9, 4  ;;  %p59_p0 = scmp.ne.s32.totalorder %s151_s1, %s58_s13  ;;  %s19_s10 = int_to_ptr.vmem [resolvable:$true] %s18_s10 }
   0x3   :  { %p62_p1 = scmp.lt.u32.totalorder %s58_s13, %s151_s1 }
   0x5   :  { %p64_p2 = pnand %p62_p1, %p59_p0 }
   0x7   :  { %67 = shalt.err (!%p64_p2)
}
   0x8   :  { %s68_s18 = scalar_lea.vmem %s19_s10, 256  ;;  %p73_p4 = scmp.lt.s32.totalorder %s19_s10, %s19_s10 }
   0x9   :  { %p69_p3 = scmp.ne.s32.totalorder %s19_s10, %s68_s18  ;;  %p74_p5 = scmp.lt.s32.totalorder %s68_s18, %s68_s18 }
   0xb   :  { %p75_p6 = por %p74_p5, %p73_p4 }
   0xd   :  { %p76_p7 = pnand %p75_p6, %p69_p3 }
   0xf   :  { %79 = shalt.err (!%p76_p7)
}
  0x10   :  { %21 = dma.hbm_to_vmem [thread:$0]  %s151_s1, 256, %s19_s10, [#allocation4]  }
  0x11   :  { %102 = dma.done.wait [#allocation4], 256  }
  0x12   :  { %103 = vsyncadd [#allocation4], 4294967040  ;;  %v28_v0 = vstv %s150_s0  ;;  %v26_v1 = vld [vmem:[#allocation3] sm:$0xff]  ;;  %v27_v2 = vld [vmem:[#allocation3 + $0x8] sm:$0xff]  ;;  %s107_s23 = smov [#allocation6]  }
  0x13   :  { %v29_v3 = vmul.f32 %v28_v0, %v26_v1  ;;  %v30_v4 = vmul.f32 %v28_v0, %v27_v2  ;;  %s43_s24 = sshll.u32 %s107_s23, 4  ;;  %s44_s24 = int_to_ptr.vmem [resolvable:$true] %s43_s24 }
  0x14   :  { %s80_s1 = scalar_lea.vmem %s44_s24, 256  ;;  %p85_p9 = scmp.lt.s32.totalorder %s44_s24, %s44_s24 }
  0x15   :  { %v31_v5 = vmul.f32 1.442695, %v29_v3  ;;  %v33_v6 = vmul.f32 1.442695, %v30_v4  ;;  %p81_p8 = scmp.ne.s32.totalorder %s44_s24, %s80_s1  ;;  %p86_p10 = scmp.lt.s32.totalorder %s80_s1, %s80_s1 }
  0x17   :  { %54 = vpow2.f32 %v31_v5  ;;  %p87_p11 = por %p86_p10, %p85_p9 }
  0x18   :  { %56 = vpow2.f32 %v33_v6 }
  0x19   :  { %p88_p12 = pnand %p87_p11, %p81_p8 }
  0x21   :  { %v55_v7 = vpop.eup %54 }
  0x22   :  { %v57_v8 = vpop.eup %56  ;;  %35 = vst [vmem:[#allocation6] sm:$0xff] %v55_v7 }
  0x23   :  { %36 = vst [vmem:[#allocation6 + $0x8] sm:$0xff] %v57_v8 }
  0x24   :  { %91 = shalt.err (!%p88_p12)
}
  0x25   :  { %s92_s26 = scalar_lea.hbm %s152_s2, 256 }
  0x26   :  { %p93_p13 = scmp.ne.s32.totalorder %s152_s2, %s92_s26  ;;  %p96_p0 = scmp.lt.u32.totalorder %s92_s26, %s152_s2 }
  0x28   :  { %p98_p1 = pnand %p96_p0, %p93_p13 }
  0x2a   :  { %101 = shalt.err (!%p98_p1)
}
  0x2b   :  { %46 = dma.vmem_to_hbm [thread:$0]  %s44_s24, 256, %s152_s2, [#allocation5]  }
  0x2c   :  { %104 = dma.done.wait [#allocation5], 256  }
  0x2d   :  { %105 = vsyncadd [#allocation5], 4294967040 }
  0x2e   :  { %50 = vsyncpa [#allocation4], 1 }
  0x2f   :  { %51 = vsyncpa [#allocation5], 1 }

</bundles_post_ra>
